<compile_context>
chip_gen: v6e
topology: v6e:2x2x1
jax: 0.10.0
libtpu: 0.0.40
codegen_flags: <defaults>
</compile_context>

<pallas_src>
import functools

import jax
import jax.numpy as jnp
from jax.experimental import pallas as pl
from jax.experimental.pallas import tpu as pltpu

GAMMA = -0.1
ZETA = 1.1
BN_EPS = 1e-5


def _round_up(x, m):
    return (x + m - 1) // m * m


# ---------------------------------------------------------------------------
# Pass 1: BatchNorm1d training-mode batch statistics over the N axis, fused
# with the affine parameters into a per-feature scale/shift:
#   scale = bn_w * rsqrt(var + eps),   shift = bn_b - mean * scale
# x is lane-dense transposed (D, N_pad); padded columns are zero and cancel.
# ---------------------------------------------------------------------------
def _bn_stats_kernel(x_ref, aff_ref, ss_ref, acc_ref, *, n_rows):
    i = pl.program_id(0)

    @pl.when(i == 0)
    def _():
        acc_ref[...] = jnp.zeros_like(acc_ref)

    x = x_ref[...]                                               # (D, TN)
    acc_ref[...] += jnp.concatenate(
        [jnp.sum(x, axis=1, keepdims=True),
         jnp.sum(x * x, axis=1, keepdims=True)], axis=1)         # (D, 2)

    @pl.when(i == pl.num_programs(0) - 1)
    def _():
        inv_n = 1.0 / n_rows
        mean = acc_ref[:, 0:1] * inv_n
        var = jnp.maximum(acc_ref[:, 1:2] * inv_n - mean * mean, 0.0)  # biased
        scale = aff_ref[:, 0:1] * jax.lax.rsqrt(var + BN_EPS)
        shift = aff_ref[:, 1:2] - mean * scale
        ss_ref[...] = jnp.concatenate([scale, shift], axis=1)


# ---------------------------------------------------------------------------
# Pass 2: row-parallel main body (normalize + 3-layer MLP + both
# BinaryApproximator elementwise paths), tiled over the lane-dense N axis.
# ---------------------------------------------------------------------------
def _generator2_kernel(x_ref, ss_ref, w1_ref, b12_ref, w2_ref, w3_ref, b3_ref,
                       elem_ref, out_ref):
    # BatchNorm1d with precomputed batch stats: per-feature scale/shift.
    xn = x_ref[...] * ss_ref[:, 0:1] + ss_ref[:, 1:2]            # (D, TN)

    # self.g: Linear -> ReLU -> Linear -> ReLU -> Linear(out=2), transposed
    # layout keeps N on the MXU/VPU lane axis.
    h1 = jnp.maximum(
        jnp.dot(w1_ref[...], xn, preferred_element_type=jnp.float32)
        + b12_ref[:, 0:1], 0.0)                                  # (H, TN)
    h2 = jnp.maximum(
        jnp.dot(w2_ref[...], h1, preferred_element_type=jnp.float32)
        + b12_ref[:, 1:2], 0.0)                                  # (H, TN)
    ab = jnp.dot(w3_ref[...], h2, preferred_element_type=jnp.float32) \
        + b3_ref[...]                                            # (2, TN)
    g_alpha = ab[0:1, :]     # torch.chunk(..., 2, dim=-1)[0].squeeze(2)
    g_beta = ab[1:2, :]      # torch.chunk(..., 2, dim=-1)[1].squeeze(2)

    u1 = elem_ref[0:1, :]
    u2 = elem_ref[1:2, :]
    c = elem_ref[2:3, :]     # log(softplus(ba_alpha)) / softplus(ba_beta)

    span = ZETA - GAMMA

    # BinaryApproximator, no-arg path (observation_scores).  Replicates the
    # PyTorch precedence: sigmoid(logit(u) + log(softplus(a)) / softplus(b)).
    s1 = jax.nn.sigmoid(jnp.log(u1) - jnp.log1p(-u1) + c)
    obs = jnp.minimum(1.0, jnp.maximum(0.0, s1 * span + GAMMA))

    # BinaryApproximator, (alpha, beta)-passed path (relevance understanding):
    # sigmoid((logit(u) + log(softplus(alpha))) / softplus(beta)).
    s2 = jax.nn.sigmoid(
        (jnp.log(u2) - jnp.log1p(-u2) + jnp.log(jax.nn.softplus(g_alpha)))
        * pl.reciprocal(jax.nn.softplus(g_beta), approx=True))
    ru = jnp.minimum(1.0, jnp.maximum(0.0, s2 * span + GAMMA))

    # Single lane-dense packed store: row0 = observation_scores,
    # row1 = fake_click_logs = obs * relevance_understanding.
    out_ref[...] = jnp.concatenate([obs, obs * ru], axis=0)      # (2, TN)


def generator2_forward(relevance_scores, params, noise1, noise2):
    """relevance_scores: (B, R, D) f32; noise1/noise2: (B, R) uniform [0,1).

    Returns (observation_scores, fake_click_logs), each (B, R) f32.
    """
    B, R, D = relevance_scores.shape
    H = params["w1"].shape[1]
    N = B * R

    # Lane-dense tiling over the flattened batch*rank axis.
    TN = min(2048, _round_up(N, 128))
    N_pad = _round_up(N, TN)
    grid = (N_pad // TN,)
    pad = N_pad - N

    # ---- layout plumbing only (transpose / pack / pad), no N-sized math ----
    x_t = jnp.pad(relevance_scores.astype(jnp.float32).reshape(N, D).T,
                  ((0, 0), (0, pad)))                            # (D, N_pad)

    # Hoisted per-rank constant (R values, not B*R): PyTorch precedence
    #   log(softplus(alpha)) / softplus(beta)
    c = (jnp.log(jax.nn.softplus(params["ba_alpha"]))
         / jax.nn.softplus(params["ba_beta"]))                   # (1, R)
    c_b = jnp.broadcast_to(c, (B, R)).reshape(1, N)

    elem = jnp.concatenate(
        [noise1.astype(jnp.float32).reshape(1, N),
         noise2.astype(jnp.float32).reshape(1, N),
         c_b.astype(jnp.float32)], axis=0)                       # (3, N)
    elem = jnp.pad(elem, ((0, 0), (0, pad)), constant_values=0.5)

    bn_aff = jnp.concatenate([params["bn_w"], params["bn_b"]], axis=0).T  # (D,2)
    w1t = params["w1"].T                                          # (H, D)
    w2t = params["w2"].T                                          # (H, H)
    w3t = params["w3"].T                                          # (2, H)
    b12 = jnp.concatenate([params["b1"], params["b2"]], axis=0).T  # (H, 2)
    b3t = params["b3"].T                                           # (2, 1)

    # ---- pass 1: BatchNorm batch stats -> fused (scale, shift), shape (D,2) ----
    ss = pl.pallas_call(
        functools.partial(_bn_stats_kernel, n_rows=float(N)),
        out_shape=jax.ShapeDtypeStruct((D, 2), jnp.float32),
        grid_spec=pltpu.PrefetchScalarGridSpec(
            num_scalar_prefetch=0,
            grid=grid,
            in_specs=[
                pl.BlockSpec((D, TN), lambda i: (0, i)),   # x_t blocks
                pl.BlockSpec((D, 2), lambda i: (0, 0)),    # bn_w | bn_b
            ],
            out_specs=pl.BlockSpec((D, 2), lambda i: (0, 0)),
            scratch_shapes=[pltpu.VMEM((D, 2), jnp.float32)],
        ),
        compiler_params=pltpu.CompilerParams(
            dimension_semantics=("arbitrary",)),           # reduction axis
    )(x_t, bn_aff)

    # ---- pass 2: row-parallel normalize + MLP + BinaryApproximator paths ----
    out = pl.pallas_call(
        _generator2_kernel,
        out_shape=jax.ShapeDtypeStruct((2, N_pad), jnp.float32),
        grid_spec=pltpu.PrefetchScalarGridSpec(
            num_scalar_prefetch=0,
            grid=grid,
            in_specs=[
                pl.BlockSpec((D, TN), lambda i: (0, i)),   # x_t
                pl.BlockSpec((D, 2), lambda i: (0, 0)),    # scale | shift
                pl.BlockSpec((H, D), lambda i: (0, 0)),    # w1^T (resident)
                pl.BlockSpec((H, 2), lambda i: (0, 0)),    # b1 | b2
                pl.BlockSpec((H, H), lambda i: (0, 0)),    # w2^T (resident)
                pl.BlockSpec((2, H), lambda i: (0, 0)),    # w3^T (resident)
                pl.BlockSpec((2, 1), lambda i: (0, 0)),    # b3^T
                pl.BlockSpec((3, TN), lambda i: (0, i)),   # u1 | u2 | c
            ],
            out_specs=pl.BlockSpec((2, TN), lambda i: (0, i)),
        ),
        compiler_params=pltpu.CompilerParams(
            dimension_semantics=("parallel",)),            # megacore-friendly
    )(x_t, ss, w1t, b12, w2t, w3t, b3t, elem)

    obs = out[0, :N].reshape(B, R)
    fake = out[1, :N].reshape(B, R)
    return obs, fake


def init_params(key, input_size, hidden_size, output_size, rank_cut):
    ks = jax.random.split(key, 8)
    # Linear weights stored as (in, out); transposed to (out, in) in the wrapper.
    return {
        "bn_w": jnp.ones((1, input_size), jnp.float32),
        "bn_b": jnp.zeros((1, input_size), jnp.float32),
        "w1": jax.random.normal(ks[0], (input_size, hidden_size), jnp.float32) * 0.1,
        "b1": jax.random.normal(ks[1], (1, hidden_size), jnp.float32) * 0.01,
        "w2": jax.random.normal(ks[2], (hidden_size, hidden_size), jnp.float32) * 0.1,
        "b2": jax.random.normal(ks[3], (1, hidden_size), jnp.float32) * 0.01,
        "w3": jax.random.normal(ks[4], (hidden_size, output_size), jnp.float32) * 0.1,
        "b3": jax.random.normal(ks[5], (1, output_size), jnp.float32) * 0.01,
        # BinaryApproximator learned params: alpha ~ randn, beta ~ rand
        "ba_alpha": jax.random.normal(ks[6], (1, rank_cut), jnp.float32),
        "ba_beta": jax.random.uniform(ks[7], (1, rank_cut), jnp.float32),
    }


if __name__ == "__main__":
    B, R, D, H = 4, 8, 16, 32   # batch, rank_cut, input_size, hidden_size
    OUT = 2                     # output_size must be 2 (chunk into alpha/beta)

    key = jax.random.PRNGKey(0)
    k_x, k_p, k_n1, k_n2 = jax.random.split(key, 4)

    relevance_scores = jax.random.normal(k_x, (B, R, D), jnp.float32)
    params = init_params(k_p, D, H, OUT, R)
    # torch.rand equivalents (internal randomness, generated deterministically)
    noise1 = jax.random.uniform(k_n1, (B, R), jnp.float32)
    noise2 = jax.random.uniform(k_n2, (B, R), jnp.float32)

    obs, fake = generator2_forward(relevance_scores, params, noise1, noise2)
    jax.block_until_ready((obs, fake))

    assert obs.shape == (B, R) and fake.shape == (B, R)
    assert bool(jnp.all(jnp.isfinite(obs))) and bool(jnp.all(jnp.isfinite(fake)))
    assert bool(jnp.all(obs >= 0.0) & jnp.all(obs <= 1.0))
    assert bool(jnp.all(fake >= 0.0) & jnp.all(fake <= 1.0))
    print("KERNEL_OK")
</pallas_src>

<mosaic_0001>
module attributes {stable_mosaic.version = 11 : i64} {
  func.func @_bn_stats_kernel(%arg0: i32, %arg1: memref<16x128xf32, #tpu.memory_space<vmem>>, %arg2: memref<16x2xf32, #tpu.memory_space<vmem>>, %arg3: memref<16x2xf32, #tpu.memory_space<vmem>>, %arg4: memref<16x2xf32, #tpu.memory_space<vmem>>) attributes {dimension_semantics = [#tpu.dimension_semantics<arbitrary>], iteration_bounds = array<i64: 1>, scalar_prefetch = 0 : i64, scratch_operands = 1 : i64, tpu.core_type = #tpu.core_type<tc>, window_params = [{transform_indices = @transform_0, window_bounds = array<i64: 16, 128>}, {pipeline_mode = #tpu.pipeline_mode<synchronous>, transform_indices = @transform_1, window_bounds = array<i64: 16, 2>}, {pipeline_mode = #tpu.pipeline_mode<synchronous>, transform_indices = @transform_2, window_bounds = array<i64: 16, 2>}]} {
    %c0_i32 = arith.constant 0 : i32
    %0 = arith.cmpi eq, %arg0, %c0_i32 : i32
    %1 = arith.extui %0 : i1 to i32
    %c0_i32_0 = arith.constant 0 : i32
    %2 = arith.cmpi ne, %1, %c0_i32_0 : i32
    scf.if %2 {
      %cst_9 = arith.constant 0.000000e+00 : f32
      %16 = vector.broadcast %cst_9 : f32 to vector<16x2xf32>
      %c0_10 = arith.constant 0 : index
      %c0_11 = arith.constant 0 : index
      %17 = vector.load %arg4[%c0_10, %c0_11] : memref<16x2xf32, #tpu.memory_space<vmem>>, vector<16x2xf32>
      tpu.vector_store %arg4[%c0_10, %c0_11], %16 {strides = array<i32>} : memref<16x2xf32, #tpu.memory_space<vmem>>, vector<16x2xf32>,
    } else {
    }
    %c0 = arith.constant 0 : index
    %c0_1 = arith.constant 0 : index
    %3 = vector.load %arg1[%c0, %c0_1] : memref<16x128xf32, #tpu.memory_space<vmem>>, vector<16x128xf32>
    %c0_2 = arith.constant 0 : index
    %c0_3 = arith.constant 0 : index
    %4 = vector.load %arg4[%c0_2, %c0_3] : memref<16x2xf32, #tpu.memory_space<vmem>>, vector<16x2xf32>
    %cst = arith.constant dense<0.000000e+00> : vector<16xf32>
    %5 = vector.multi_reduction <add>, %3, %cst [1] : vector<16x128xf32> to vector<16xf32>
    %6 = vector.shape_cast %5 : vector<16xf32> to vector<16x1xf32>
    %7 = arith.mulf %3, %3 : vector<16x128xf32>
    %cst_4 = arith.constant dense<0.000000e+00> : vector<16xf32>
    %8 = vector.multi_reduction <add>, %7, %cst_4 [1] : vector<16x128xf32> to vector<16xf32>
    %9 = vector.shape_cast %8 : vector<16xf32> to vector<16x1xf32>
    %10 = tpu.concatenate %6, %9 in 1 : vector<16x1xf32>, vector<16x1xf32> -> vector<16x2xf32>
    %11 = arith.addf %4, %10 : vector<16x2xf32>
    %c0_5 = arith.constant 0 : index
    %c0_6 = arith.constant 0 : index
    %12 = vector.load %arg4[%c0_5, %c0_6] : memref<16x2xf32, #tpu.memory_space<vmem>>, vector<16x2xf32>
    tpu.vector_store %arg4[%c0_5, %c0_6], %11 {strides = array<i32>} : memref<16x2xf32, #tpu.memory_space<vmem>>, vector<16x2xf32>,
    %c0_i32_7 = arith.constant 0 : i32
    %13 = arith.cmpi eq, %arg0, %c0_i32_7 : i32
    %14 = arith.extui %13 : i1 to i32
    %c0_i32_8 = arith.constant 0 : i32
    %15 = arith.cmpi ne, %14, %c0_i32_8 : i32
    scf.if %15 {
      %c0_9 = arith.constant 0 : index
      %c0_10 = arith.constant 0 : index
      %16 = vector.load %arg4[%c0_9, %c0_10] : memref<16x2xf32, #tpu.memory_space<vmem>>, vector<16x1xf32>
      %cst_11 = arith.constant 3.125000e-02 : f32
      %17 = vector.broadcast %cst_11 : f32 to vector<16x1xf32>
      %18 = arith.mulf %16, %17 : vector<16x1xf32>
      %c0_12 = arith.constant 0 : index
      %c1 = arith.constant 1 : index
      %19 = vector.load %arg4[%c0_12, %c1] : memref<16x2xf32, #tpu.memory_space<vmem>>, vector<16x1xf32>
      %cst_13 = arith.constant 3.125000e-02 : f32
      %20 = vector.broadcast %cst_13 : f32 to vector<16x1xf32>
      %21 = arith.mulf %19, %20 : vector<16x1xf32>
      %22 = arith.mulf %18, %18 : vector<16x1xf32>
      %23 = arith.subf %21, %22 : vector<16x1xf32>
      %cst_14 = arith.constant 0.000000e+00 : f32
      %24 = vector.broadcast %cst_14 : f32 to vector<16x1xf32>
      %25 = arith.maximumf %23, %24 : vector<16x1xf32>
      %c0_15 = arith.constant 0 : index
      %c0_16 = arith.constant 0 : index
      %26 = vector.load %arg2[%c0_15, %c0_16] : memref<16x2xf32, #tpu.memory_space<vmem>>, vector<16x1xf32>
      %cst_17 = arith.constant 9.99999974E-6 : f32
      %27 = vector.broadcast %cst_17 : f32 to vector<16x1xf32>
      %28 = arith.addf %25, %27 : vector<16x1xf32>
      %29 = math.rsqrt %28 : vector<16x1xf32>
      %30 = arith.mulf %26, %29 : vector<16x1xf32>
      %c0_18 = arith.constant 0 : index
      %c1_19 = arith.constant 1 : index
      %31 = vector.load %arg2[%c0_18, %c1_19] : memref<16x2xf32, #tpu.memory_space<vmem>>, vector<16x1xf32>
      %32 = arith.mulf %18, %30 : vector<16x1xf32>
      %33 = arith.subf %31, %32 : vector<16x1xf32>
      %34 = tpu.concatenate %30, %33 in 1 : vector<16x1xf32>, vector<16x1xf32> -> vector<16x2xf32>
      %c0_20 = arith.constant 0 : index
      %c0_21 = arith.constant 0 : index
      %35 = vector.load %arg3[%c0_20, %c0_21] : memref<16x2xf32, #tpu.memory_space<vmem>>, vector<16x2xf32>
      tpu.vector_store %arg3[%c0_20, %c0_21], %34 {strides = array<i32>} : memref<16x2xf32, #tpu.memory_space<vmem>>, vector<16x2xf32>,
    } else {
    }
    return
  }
  func.func @transform_0(%arg0: i32) -> (i32, i32) {
    %c0_i32 = arith.constant 0 : i32
    %c0_i32_0 = arith.constant 0 : i32
    return %c0_i32, %arg0 : i32, i32
  }
  func.func @transform_1(%arg0: i32) -> (i32, i32) {
    %c0_i32 = arith.constant 0 : i32
    %c0_i32_0 = arith.constant 0 : i32
    %c0_i32_1 = arith.constant 0 : i32
    return %c0_i32, %c0_i32_0 : i32, i32
  }
  func.func @transform_2(%arg0: i32) -> (i32, i32) {
    %c0_i32 = arith.constant 0 : i32
    %c0_i32_0 = arith.constant 0 : i32
    %c0_i32_1 = arith.constant 0 : i32
    return %c0_i32, %c0_i32_0 : i32, i32
  }
}

</mosaic_0001>

<bundles_post_ra>
// kernel: tpu_custom_call.1
= control target key start
LH: loop header
LB: loop body
LE: loop exit
PB: predicated region body
PF: predicated region fallthrough
CT: control target
= control target key end

     0   :  { %vm15_vm0 = vcmask 15360   ;;  %v104_v4 = vmov 0.0   ;;  %vm32_vm1 = vcmask 7168   ;;  %s106_s13 = smov 127   ;;  %s150_s0 = inlined_call_operand.vmem [shape: f32[16,128], index: 0, kind: input, shape index: {}]   ;;  %s151_s1 = inlined_call_operand.vmem [shape: f32[16,2], index: 1, kind: input, shape index: {}]   ;;  %s152_s2 = inlined_call_operand.vmem [shape: f32[16,2], index: 2, kind: output, shape index: {}]  }
   0x1   :  { %v18_v0 = vld [vmem:[%s150_s0] sm:$0xff]  ;;  %v19_v1 = vld [vmem:[%s150_s0 + $0x8] sm:$0xff]  ;;  %16 = vst.msk [vmem:[#allocation2] sm:$0xff] %vm15_vm0, %v104_v4  ;;  %17 = vst.msk [vmem:[#allocation2 + $0x8] sm:$0xff] %vm15_vm0, %v104_v4  ;;  %s105_s0 = smov 1  }
   0x2   :  { %22 = vadd.xlane.f32.xlu0 %v18_v0  ;;  %v26_v2 = vmul.f32 %v18_v0, %v18_v0  ;;  %v27_v3 = vmul.f32 %v19_v1, %v19_v1  ;;  %v61_v31 = vld [vmem:[%s151_s1] sm:$0xff]  ;;  %v62_v34 = vld [vmem:[%s151_s1 + $0x8] sm:$0xff] }
   0x4   :  { %28 = vadd.xlane.f32.xlu1 %v26_v2 }
   0x6   :  { %24 = vadd.xlane.f32.xlu0 %v19_v1 }
   0x8   :  { %30 = vadd.xlane.f32.xlu1 %v27_v3  ;;  %v20_v6 = vld [vmem:[#allocation2] sm:$0xff]  ;;  %v21_v11 = vld [vmem:[#allocation2 + $0x8] sm:$0xff] }
  0x8b   :  { %v23_v5 = vpop.xlane.xlu0 %22 }
  0x8d   :  { %v29_v7 = vpop.xlane.xlu1 %28 }
  0x8e   :  { %v33_v8 = vsel %vm32_vm1, %v23_v5, %v29_v7 }
  0x8f   :  { %v35_v9 = vadd.f32 %v33_v8, %v20_v6  ;;  %v25_v10 = vpop.xlane.xlu0 %24 }
  0x91   :  { %38 = vst.msk [vmem:[#allocation2] sm:$0xff] %vm15_vm0, %v35_v9  ;;  %v31_v12 = vpop.xlane.xlu1 %30 }
  0x92   :  { %v34_v13 = vsel %vm32_vm1, %v25_v10, %v31_v12 }
  0x93   :  { %v36_v14 = vadd.f32 %v34_v13, %v21_v11 }
  0x95   :  { %39 = vst.msk [vmem:[#allocation2 + $0x8] sm:$0xff] %vm15_vm0, %v36_v14 }
  0x98   :  { %v43_v15 = vld [vmem:[#allocation2] sm:$0xff] }
  0x99   :  { %v45_v16 = vmul.f32 0.03125, %v43_v15 }
  0x9b   :  { %v47_v17 = vmul.f32 %v45_v16, %v45_v16 }
  0x9c   :  { %v44_v18 = vld [vmem:[#allocation2 + $0x8] sm:$0xff] }
  0x9d   :  { %51 = vrot.lane.b32.xlu0 %v47_v17, %s105_s0  ;;  %v46_v19 = vmul.f32 0.03125, %v44_v18 }
  0x9f   :  { %v48_v20 = vmul.f32 %v46_v19, %v46_v19 }
  0xa1   :  { %53 = vrot.lane.b32.xlu1 %v48_v20, %s105_s0 }
 0x10f   :  { %v52_v21 = vpop.permute.xlu0 %51 }
 0x110   :  { %v57_v22 = vsub.f32 %v45_v16, %v52_v21 }
 0x112   :  { %v59_v23 = vmax.f32 %v57_v22, 0.0 }
 0x113   :  { %v54_v24 = vpop.permute.xlu1 %53 }
 0x114   :  { %v63_v25 = vadd.f32 1e-05, %v59_v23  ;;  %v58_v26 = vsub.f32 %v46_v19, %v54_v24 }
 0x116   :  { %100 = vrsqrt.f32 %v63_v25  ;;  %v60_v27 = vmax.f32 %v58_v26, 0.0 }
 0x118   :  { %v64_v28 = vadd.f32 1e-05, %v60_v27 }
 0x11a   :  { %102 = vrsqrt.f32 %v64_v28 }
 0x123   :  { %v101_v29 = vpop.eup %100 }
 0x124   :  { %69 = vrot.lane.b32.xlu1 %v101_v29, %s106_s13 }
 0x127   :  { %v103_v30 = vpop.eup %102 }
 0x128   :  { %71 = vrot.lane.b32.xlu1 %v103_v30, %s106_s13 }
 0x196   :  { %v70_v32 = vpop.permute.xlu1 %69 }
 0x197   :  { %v75_v33 = vmul.f32 %v70_v32, %v61_v31 }
 0x199   :  { %v77_v35 = vmul.f32 %v75_v33, %v45_v16 }
 0x19a   :  { %v72_v36 = vpop.permute.xlu1 %71 }
 0x19b   :  { %v76_v37 = vmul.f32 %v72_v36, %v62_v34  ;;  %81 = vrot.lane.b32.xlu0 %v77_v35, %s105_s0 }
 0x19d   :  { %v78_v38 = vmul.f32 %v76_v37, %v46_v19 }
 0x19f   :  { %83 = vrot.lane.b32.xlu1 %v78_v38, %s105_s0 }
 0x20d   :  { %v82_v39 = vpop.permute.xlu0 %81 }
 0x20e   :  { %v87_v40 = vsub.f32 %v61_v31, %v82_v39 }
 0x210   :  { %v89_v41 = vsel %vm32_vm1, %v75_v33, %v87_v40 }
 0x211   :  { %91 = vst.msk [vmem:[%s152_s2] sm:$0xff] %vm15_vm0, %v89_v41  ;;  %v84_v42 = vpop.permute.xlu1 %83 }
 0x212   :  { %v88_v43 = vsub.f32 %v62_v34, %v84_v42 }
 0x214   :  { %v90_v44 = vsel %vm32_vm1, %v76_v37, %v88_v43 }
 0x215   :  { %92 = vst.msk [vmem:[%s152_s2 + $0x8] sm:$0xff] %vm15_vm0, %v90_v44 }

</bundles_post_ra>
